<compile_context>
chip_gen: v7x
topology: tpu7x:2x2x1
jax: 0.10.0
libtpu: 0.0.40
codegen_flags: <defaults>
</compile_context>

<pallas_src>
import functools

import numpy as np
import jax
import jax.numpy as jnp
from jax.experimental import pallas as pl
from jax.experimental.pallas import tpu as pltpu

_EPS = 1e-5
# NOTE(v5e): HIGHEST turns f32 matmuls into multi-pass MXU work; on v5e the
# streaming pass can flip MXU-bound for realistic C — drop this to
# jax.lax.Precision.HIGH there.  v6e/v7x have the MXU headroom to keep HIGHEST.
_MXU_PRECISION = jax.lax.Precision.HIGHEST

_V7X_SAFE_VMEM = 48 * 1024 * 1024      # v7x has 64 MiB physical VMEM per TC
_BLOCK_BYTES_BUDGET = 8 * 1024 * 1024  # per-buffer x-tile budget (double-buffered)
_MAX_BLOCK_N = 8                       # bounds static unrolling in the stats kernel


def _pick_block_n(N, C, TV):
    """Largest divisor of N whose (Nb, C, TV) f32 tile fits the budget (<= 8)."""
    per_sample = C * TV * 4
    cap = max(1, min(_MAX_BLOCK_N, _BLOCK_BYTES_BUDGET // max(per_sample, 1)))
    nb = 1
    for d in range(1, min(N, cap) + 1):
        if N % d == 0:
            nb = d
    return nb


def _vmem_limit(need_bytes):
    need = int(need_bytes) + (4 << 20)
    if need > _V7X_SAFE_VMEM:
        return need                      # oversized single tile: let Mosaic try
    return max(need, 16 << 20)


# --------------------------------------------------------------------------
# Pass A: per-block streaming stats.  x block = (Nb, C, T*V).
#   sel_ref  (V, TV)   : lane-dense 0/1 T-pooling selector, VMEM-resident.
#   xtx_ref  (C, C)    : accumulated sum over all samples of x @ x^T.
#   pool_ref (N, C, V) : VMEM-resident; row n = sample n's sum over T.
# --------------------------------------------------------------------------
def _stats_kernel(x_ref, sel_ref, xtx_ref, pool_ref, *, Nb):
    blk = pl.program_id(0)

    @pl.when(blk == 0)
    def _():
        xtx_ref[...] = jnp.zeros_like(xtx_ref)

    sel = sel_ref[...]                                     # (V, TV), resident
    base = blk * Nb
    acc = jnp.zeros(xtx_ref.shape, jnp.float32)
    for i in range(Nb):                                    # Nb <= 8: static unroll
        xi = x_ref[i]                                      # (C, TV)
        acc = acc + jax.lax.dot_general(
            xi, xi, (((1,), (1,)), ((), ())),
            precision=_MXU_PRECISION, preferred_element_type=jnp.float32)
        # pooled[c, v] = sum_t xi[c, t*V + v]  (trans_b MXU dot with the selector)
        pool_ref[base + i] = jax.lax.dot_general(
            xi, sel, (((1,), (1,)), ((), ())),
            precision=_MXU_PRECISION, preferred_element_type=jnp.float32)
    xtx_ref[...] += acc


# --------------------------------------------------------------------------
# Pass B: node attention.  att_node = sigmoid(sum_c w[c] * x[:, c, :] + b)
# (BN0, att_conv, att_node_conv and att_node_bn are all folded into w, b).
# x block (Nb, C, TV); output block (Nb, 1, TV) is lane-dense.
# --------------------------------------------------------------------------
def _node_kernel(x_ref, w_ref, b_ref, o_ref):
    xb = x_ref[...]                                        # (Nb, C, TV)
    w = w_ref[...]                                         # (1, C, 1)
    xn = jnp.sum(xb * w, axis=1, keepdims=True) + b_ref[0]  # (Nb, 1, TV)
    o_ref[...] = jax.nn.sigmoid(xn)


# --------------------------------------------------------------------------
# Pass C: adjacency attention on the tiny pooled data.
#   xp (N*V, C) rows = (n, v_col);  w (C, M*V);  out (N*V, M*V)
# Train-mode BN over rows (n and v_col) per output channel, then relu(tanh).
# --------------------------------------------------------------------------
def _adj_kernel(xp_ref, w_ref, b_ref, g_ref, bt_ref, o_ref):
    y = jnp.dot(xp_ref[...], w_ref[...], precision=_MXU_PRECISION,
                preferred_element_type=jnp.float32) + b_ref[...]
    mean = jnp.mean(y, axis=0, keepdims=True)
    var = jnp.mean((y - mean) ** 2, axis=0, keepdims=True)
    y = (y - mean) * jax.lax.rsqrt(var + _EPS) * g_ref[...] + bt_ref[...]
    o_ref[...] = jnp.maximum(jnp.tanh(y), 0.0)


@functools.partial(jax.jit, static_argnames=("num_class", "num_att_A"))
def attention_branch_forward(x, params, *, num_class, num_att_A):
    """x: (N, C, T, V) float32 (NCHW).  Returns (att_node, att_A)."""
    N, C, T, V = x.shape
    M = num_att_A
    TV = T * V
    NTV = N * TV

    x3 = x.reshape(N, C, TV)              # free reshape (contiguous NCHW)
    Nb = _pick_block_n(N, C, TV)
    nblk = N // Nb

    # Lane-dense (V, TV) 0/1 selector for the T-pooling, built once (never rebuilt
    # on-chip) and kept VMEM-resident via a constant index_map.
    sel = (jnp.arange(TV, dtype=jnp.int32)[None, :] % V ==
           jnp.arange(V, dtype=jnp.int32)[:, None]).astype(jnp.float32)

    x_tile_bytes = Nb * C * TV * 4
    resident_a_bytes = (V * TV + C * C + N * C * V) * 4

    # ---------------- Pass A: global moments + T-pooled sums ----------------
    xtx, poolsum = pl.pallas_call(
        functools.partial(_stats_kernel, Nb=Nb),
        grid=(nblk,),
        in_specs=[
            pl.BlockSpec((Nb, C, TV), lambda b: (b, 0, 0)),
            pl.BlockSpec((V, TV), lambda b: (0, 0)),        # resident selector
        ],
        out_specs=[
            pl.BlockSpec((C, C), lambda b: (0, 0)),          # resident accumulator
            pl.BlockSpec((N, C, V), lambda b: (0, 0, 0)),    # resident pooled sums
        ],
        out_shape=(
            jax.ShapeDtypeStruct((C, C), jnp.float32),
            jax.ShapeDtypeStruct((N, C, V), jnp.float32),
        ),
        compiler_params=pltpu.CompilerParams(
            dimension_semantics=("arbitrary",),
            vmem_limit_bytes=_vmem_limit(2 * x_tile_bytes + 2 * resident_a_bytes),
        ),
    )(x3, sel)

    # ---------------- tiny glue: fold the BNs into the conv weights ----------
    sum_x = jnp.sum(poolsum, axis=(0, 2))                   # (C,)
    mean0 = sum_x / NTV
    s2 = xtx / NTV                                           # E[x x^T]
    var0 = jnp.maximum(jnp.diagonal(s2) - mean0 * mean0, 0.0)   # clamp (review)
    s0 = params["bn0_g"][0] * jax.lax.rsqrt(var0 + _EPS)     # (C,)
    t0 = params["bn0_b"][0] - mean0 * s0                     # (C,)

    w_att = params["w_att"]                                  # (C, K)
    w1 = s0[:, None] * w_att                                 # BN0 folded: (C, K)
    b1 = jnp.dot(t0, w_att, precision=_MXU_PRECISION)        # (K,)

    wn = params["w_node"][:, 0]                              # (K,)
    w2 = jnp.dot(w1, wn, precision=_MXU_PRECISION)           # (C,)
    b2 = jnp.dot(b1, wn, precision=_MXU_PRECISION)           # ()
    mean_node = jnp.dot(mean0, w2, precision=_MXU_PRECISION) + b2
    cov = s2 - jnp.outer(mean0, mean0)
    var_node = jnp.maximum(
        jnp.dot(w2, jnp.dot(cov, w2, precision=_MXU_PRECISION),
                precision=_MXU_PRECISION), 0.0)              # clamp (review)
    a_n = params["bnn_g"][0, 0] * jax.lax.rsqrt(var_node + _EPS)
    c_n = params["bnn_b"][0, 0] - a_n * mean_node
    w_node_fold = (a_n * w2).reshape(1, C, 1)                # (1, C, 1)
    b_node_fold = (a_n * b2 + c_n).reshape(1)                # (1,) scalar -> SMEM

    # ---------------- Pass B: node attention (batched, lane-dense output) ----
    att_node_flat = pl.pallas_call(
        _node_kernel,
        grid=(nblk,),
        in_specs=[
            pl.BlockSpec((Nb, C, TV), lambda b: (b, 0, 0)),
            pl.BlockSpec((1, C, 1), lambda b: (0, 0, 0)),
            pl.BlockSpec(memory_space=pltpu.MemorySpace.SMEM),   # scalar bias
        ],
        out_specs=pl.BlockSpec((Nb, 1, TV), lambda b: (b, 0, 0)),
        out_shape=jax.ShapeDtypeStruct((N, 1, TV), jnp.float32),
        compiler_params=pltpu.CompilerParams(
            dimension_semantics=("parallel",),
            vmem_limit_bytes=_vmem_limit(2 * x_tile_bytes + 2 * Nb * TV * 4),
        ),
    )(x3, w_node_fold, b_node_fold)
    att_node = att_node_flat.reshape(N, 1, T, V)

    # ---------------- Pass C: adjacency attention (tiny, fully VMEM resident) -
    pooled_mean = poolsum / T                                # (N, C, V)
    xp = pooled_mean.transpose(0, 2, 1).reshape(N * V, C)    # rows = (n, v_col)
    wA_fold = jnp.dot(w1, params["w_A"], precision=_MXU_PRECISION)     # (C, M*V)
    bA_fold = jnp.dot(b1, params["w_A"], precision=_MXU_PRECISION).reshape(1, M * V)

    att_A_flat = pl.pallas_call(
        _adj_kernel,
        grid=(1,),
        in_specs=[
            pl.BlockSpec((N * V, C), lambda i: (0, 0)),
            pl.BlockSpec((C, M * V), lambda i: (0, 0)),
            pl.BlockSpec((1, M * V), lambda i: (0, 0)),
            pl.BlockSpec((1, M * V), lambda i: (0, 0)),
            pl.BlockSpec((1, M * V), lambda i: (0, 0)),
        ],
        out_specs=pl.BlockSpec((N * V, M * V), lambda i: (0, 0)),
        out_shape=jax.ShapeDtypeStruct((N * V, M * V), jnp.float32),
        compiler_params=pltpu.CompilerParams(
            dimension_semantics=("arbitrary",)),
    )(xp, wA_fold, bA_fold, params["bnA_g"], params["bnA_b"])

    # rows = (n, v_col), cols = (m, v_row)  ->  (N, M, v_row, v_col)
    att_A = att_A_flat.reshape(N, V, M, V).transpose(0, 2, 3, 1)
    return att_node, att_A


def _reference_forward(x, params, *, num_class, num_att_A):
    """Pure-JAX replica of the PyTorch forward (non-STAGCN branch, train-mode BN)."""
    N, C, T, V = x.shape
    M = num_att_A

    def bn(y, g, b):
        mean = jnp.mean(y, axis=(0, 2, 3), keepdims=True)
        var = jnp.mean((y - mean) ** 2, axis=(0, 2, 3), keepdims=True)
        return (y - mean) / jnp.sqrt(var + _EPS) * g.reshape(1, -1, 1, 1) + b.reshape(1, -1, 1, 1)

    x_att = bn(x, params["bn0_g"][0], params["bn0_b"][0])
    x_att = jnp.einsum("nchw,ck->nkhw", x_att, params["w_att"], precision="highest")
    x_node = jnp.einsum("nkhw,ko->nohw", x_att, params["w_node"], precision="highest")
    x_node = bn(x_node, params["bnn_g"][0], params["bnn_b"][0])
    att_node = jax.nn.sigmoid(x_node)                       # interpolate == identity
    x_A = jnp.mean(x_att, axis=2, keepdims=True)            # avg_pool2d((T,1))
    x_A = jnp.einsum("nkhw,kc->nchw", x_A, params["w_A"], precision="highest")
    x_A = bn(x_A, params["bnA_g"][0], params["bnA_b"][0])
    x_A = x_A.reshape(N, M, V, V)
    att_A = jnp.maximum(jnp.tanh(x_A), 0.0)
    return att_node, att_A


if __name__ == "__main__":
    # Small shapes consistent with the module.
    N, C, T, V = 2, 4, 16, 16
    num_class, num_att_A = 8, 4

    key = jax.random.PRNGKey(0)
    ks = jax.random.split(key, 8)
    x = jax.random.normal(ks[0], (N, C, T, V), dtype=jnp.float32)

    # Deterministic parameter init (conv weights stored already transposed: (in, out)).
    params = {
        "w_att":  0.3 * jax.random.normal(ks[1], (C, num_class), dtype=jnp.float32),
        "w_node": 0.3 * jax.random.normal(ks[2], (num_class, 1), dtype=jnp.float32),
        "w_A":    0.3 * jax.random.normal(ks[3], (num_class, num_att_A * V), dtype=jnp.float32),
        "bn0_g":  1.0 + 0.1 * jax.random.normal(ks[4], (1, C), dtype=jnp.float32),
        "bn0_b":  0.1 * jax.random.normal(ks[5], (1, C), dtype=jnp.float32),
        "bnn_g":  jnp.ones((1, 1), dtype=jnp.float32),
        "bnn_b":  jnp.zeros((1, 1), dtype=jnp.float32),
        "bnA_g":  1.0 + 0.1 * jax.random.normal(ks[6], (1, num_att_A * V), dtype=jnp.float32),
        "bnA_b":  0.1 * jax.random.normal(ks[7], (1, num_att_A * V), dtype=jnp.float32),
    }

    att_node, att_A = attention_branch_forward(
        x, params, num_class=num_class, num_att_A=num_att_A)
    jax.block_until_ready((att_node, att_A))

    ref_node, ref_A = _reference_forward(
        x, params, num_class=num_class, num_att_A=num_att_A)
    np.testing.assert_allclose(np.asarray(att_node), np.asarray(ref_node), rtol=1e-4, atol=1e-4)
    np.testing.assert_allclose(np.asarray(att_A), np.asarray(ref_A), rtol=1e-4, atol=1e-4)

    assert att_node.shape == (N, 1, T, V)
    assert att_A.shape == (N, num_att_A, V, V)
    # TODO(synk): the PRETRAIN_SETTING=='STAGCN' Stgc_block chain is not part of
    # this branch's forward and is not implemented here.
    print("KERNEL_OK")
</pallas_src>

<mosaic_0001>
module attributes {stable_mosaic.version = 11 : i64} {
  func.func @_stats_kernel(%arg0: i32, %arg1: memref<2x4x256xf32, #tpu.memory_space<vmem>>, %arg2: memref<16x256xf32, #tpu.memory_space<vmem>>, %arg3: memref<4x4xf32, #tpu.memory_space<vmem>>, %arg4: memref<2x4x16xf32, #tpu.memory_space<vmem>>) attributes {dimension_semantics = [#tpu.dimension_semantics<arbitrary>], iteration_bounds = array<i64: 1>, scalar_prefetch = 0 : i64, scratch_operands = 0 : i64, tpu.core_type = #tpu.core_type<tc>, window_params = [{transform_indices = @transform_0, window_bounds = array<i64: 2, 4, 256>}, {pipeline_mode = #tpu.pipeline_mode<synchronous>, transform_indices = @transform_1, window_bounds = array<i64: 16, 256>}, {pipeline_mode = #tpu.pipeline_mode<synchronous>, transform_indices = @transform_2, window_bounds = array<i64: 4, 4>}, {pipeline_mode = #tpu.pipeline_mode<synchronous>, transform_indices = @transform_3, window_bounds = array<i64: 2, 4, 16>}]} {
    %c0_i32 = arith.constant 0 : i32
    %0 = arith.cmpi eq, %arg0, %c0_i32 : i32
    %1 = arith.extui %0 : i1 to i32
    %c0_i32_0 = arith.constant 0 : i32
    %2 = arith.cmpi ne, %1, %c0_i32_0 : i32
    scf.if %2 {
      %cst_20 = arith.constant 0.000000e+00 : f32
      %29 = vector.broadcast %cst_20 : f32 to vector<4x4xf32>
      %c0_21 = arith.constant 0 : index
      %c0_22 = arith.constant 0 : index
      %30 = vector.load %arg3[%c0_21, %c0_22] : memref<4x4xf32, #tpu.memory_space<vmem>>, vector<4x4xf32>
      tpu.vector_store %arg3[%c0_21, %c0_22], %29 {strides = array<i32>} : memref<4x4xf32, #tpu.memory_space<vmem>>, vector<4x4xf32>,
    } else {
    }
    %c0 = arith.constant 0 : index
    %c0_1 = arith.constant 0 : index
    %3 = vector.load %arg2[%c0, %c0_1] : memref<16x256xf32, #tpu.memory_space<vmem>>, vector<16x256xf32>
    %c2_i32 = arith.constant 2 : i32
    %4 = arith.muli %arg0, %c2_i32 : i32
    %cst = arith.constant 0.000000e+00 : f32
    %5 = vector.broadcast %cst : f32 to vector<4x4xf32>
    %c0_2 = arith.constant 0 : index
    %c0_3 = arith.constant 0 : index
    %c0_4 = arith.constant 0 : index
    %6 = vector.load %arg1[%c0_2, %c0_3, %c0_4] : memref<2x4x256xf32, #tpu.memory_space<vmem>>, vector<1x4x256xf32>
    %7 = vector.shape_cast %6 : vector<1x4x256xf32> to vector<4x256xf32>
    %cst_5 = arith.constant dense<0.000000e+00> : vector<4x4xf32>
    %8 = tpu.matmul %7, %7, %cst_5 {dimension_numbers = #tpu.dot_dimension_numbers<[1], [1], [0], [0], [0, 0, 1, 0], [], []>, precision = #tpu.contract_precision<fp32>} : vector<4x256xf32>, vector<4x256xf32>, vector<4x4xf32> -> vector<4x4xf32>
    %9 = arith.addf %5, %8 : vector<4x4xf32>
    %cst_6 = arith.constant dense<0.000000e+00> : vector<4x16xf32>
    %10 = tpu.matmul %7, %3, %cst_6 {dimension_numbers = #tpu.dot_dimension_numbers<[1], [1], [0], [0], [0, 0, 1, 0], [], []>, precision = #tpu.contract_precision<fp32>} : vector<4x256xf32>, vector<16x256xf32>, vector<4x16xf32> -> vector<4x16xf32>
    %c0_i32_7 = arith.constant 0 : i32
    %11 = arith.addi %4, %c0_i32_7 : i32
    %12 = arith.index_cast %11 : i32 to index
    %c0_8 = arith.constant 0 : index
    %c0_9 = arith.constant 0 : index
    %13 = vector.load %arg4[%12, %c0_8, %c0_9] : memref<2x4x16xf32, #tpu.memory_space<vmem>>, vector<1x4x16xf32>
    %14 = vector.shape_cast %13 : vector<1x4x16xf32> to vector<4x16xf32>
    %15 = vector.shape_cast %10 : vector<4x16xf32> to vector<1x4x16xf32>
    tpu.vector_store %arg4[%12, %c0_8, %c0_9], %15 {strides = array<i32>} : memref<2x4x16xf32, #tpu.memory_space<vmem>>, vector<1x4x16xf32>,
    %c1 = arith.constant 1 : index
    %c0_10 = arith.constant 0 : index
    %c0_11 = arith.constant 0 : index
    %16 = vector.load %arg1[%c1, %c0_10, %c0_11] : memref<2x4x256xf32, #tpu.memory_space<vmem>>, vector<1x4x256xf32>
    %17 = vector.shape_cast %16 : vector<1x4x256xf32> to vector<4x256xf32>
    %cst_12 = arith.constant dense<0.000000e+00> : vector<4x4xf32>
    %18 = tpu.matmul %17, %17, %cst_12 {dimension_numbers = #tpu.dot_dimension_numbers<[1], [1], [0], [0], [0, 0, 1, 0], [], []>, precision = #tpu.contract_precision<fp32>} : vector<4x256xf32>, vector<4x256xf32>, vector<4x4xf32> -> vector<4x4xf32>
    %19 = arith.addf %9, %18 : vector<4x4xf32>
    %cst_13 = arith.constant dense<0.000000e+00> : vector<4x16xf32>
    %20 = tpu.matmul %17, %3, %cst_13 {dimension_numbers = #tpu.dot_dimension_numbers<[1], [1], [0], [0], [0, 0, 1, 0], [], []>, precision = #tpu.contract_precision<fp32>} : vector<4x256xf32>, vector<16x256xf32>, vector<4x16xf32> -> vector<4x16xf32>
    %c1_i32 = arith.constant 1 : i32
    %21 = arith.addi %4, %c1_i32 : i32
    %22 = arith.index_cast %21 : i32 to index
    %c0_14 = arith.constant 0 : index
    %c0_15 = arith.constant 0 : index
    %23 = vector.load %arg4[%22, %c0_14, %c0_15] : memref<2x4x16xf32, #tpu.memory_space<vmem>>, vector<1x4x16xf32>
    %24 = vector.shape_cast %23 : vector<1x4x16xf32> to vector<4x16xf32>
    %25 = vector.shape_cast %20 : vector<4x16xf32> to vector<1x4x16xf32>
    tpu.vector_store %arg4[%22, %c0_14, %c0_15], %25 {strides = array<i32>} : memref<2x4x16xf32, #tpu.memory_space<vmem>>, vector<1x4x16xf32>,
    %c0_16 = arith.constant 0 : index
    %c0_17 = arith.constant 0 : index
    %26 = vector.load %arg3[%c0_16, %c0_17] : memref<4x4xf32, #tpu.memory_space<vmem>>, vector<4x4xf32>
    %27 = arith.addf %26, %19 : vector<4x4xf32>
    %c0_18 = arith.constant 0 : index
    %c0_19 = arith.constant 0 : index
    %28 = vector.load %arg3[%c0_18, %c0_19] : memref<4x4xf32, #tpu.memory_space<vmem>>, vector<4x4xf32>
    tpu.vector_store %arg3[%c0_18, %c0_19], %27 {strides = array<i32>} : memref<4x4xf32, #tpu.memory_space<vmem>>, vector<4x4xf32>,
    return
  }
  func.func @transform_0(%arg0: i32) -> (i32, i32, i32) {
    %c0_i32 = arith.constant 0 : i32
    %c0_i32_0 = arith.constant 0 : i32
    %c0_i32_1 = arith.constant 0 : i32
    return %arg0, %c0_i32, %c0_i32_0 : i32, i32, i32
  }
  func.func @transform_1(%arg0: i32) -> (i32, i32) {
    %c0_i32 = arith.constant 0 : i32
    %c0_i32_0 = arith.constant 0 : i32
    %c0_i32_1 = arith.constant 0 : i32
    return %c0_i32, %c0_i32_0 : i32, i32
  }
  func.func @transform_2(%arg0: i32) -> (i32, i32) {
    %c0_i32 = arith.constant 0 : i32
    %c0_i32_0 = arith.constant 0 : i32
    %c0_i32_1 = arith.constant 0 : i32
    return %c0_i32, %c0_i32_0 : i32, i32
  }
  func.func @transform_3(%arg0: i32) -> (i32, i32, i32) {
    %c0_i32 = arith.constant 0 : i32
    %c0_i32_0 = arith.constant 0 : i32
    %c0_i32_1 = arith.constant 0 : i32
    %c0_i32_2 = arith.constant 0 : i32
    return %c0_i32, %c0_i32_0, %c0_i32_1 : i32, i32, i32
  }
}

module attributes {stable_mosaic.version = 11 : i64} {
  func.func @_node_kernel(%arg0: i32, %arg1: memref<2x4x256xf32, #tpu.memory_space<vmem>>, %arg2: memref<1x4x1xf32, #tpu.memory_space<vmem>>, %arg3: memref<1xf32, #tpu.memory_space<smem>>, %arg4: memref<2x1x256xf32, #tpu.memory_space<vmem>>) attributes {dimension_semantics = [#tpu.dimension_semantics<parallel>], iteration_bounds = array<i64: 1>, scalar_prefetch = 0 : i64, scratch_operands = 0 : i64, tpu.core_type = #tpu.core_type<tc>, window_params = [{transform_indices = @transform_0, window_bounds = array<i64: 2, 4, 256>}, {pipeline_mode = #tpu.pipeline_mode<synchronous>, transform_indices = @transform_1, window_bounds = array<i64: 1, 4, 1>}, {transform_indices = @transform_2, window_bounds = array<i64: 1>}, {transform_indices = @transform_3, window_bounds = array<i64: 2, 1, 256>}]} {
    %c0 = arith.constant 0 : index
    %c0_0 = arith.constant 0 : index
    %c0_1 = arith.constant 0 : index
    %0 = vector.load %arg1[%c0, %c0_0, %c0_1] : memref<2x4x256xf32, #tpu.memory_space<vmem>>, vector<2x4x256xf32>
    %c0_2 = arith.constant 0 : index
    %c0_3 = arith.constant 0 : index
    %c0_4 = arith.constant 0 : index
    %1 = vector.load %arg2[%c0_2, %c0_3, %c0_4] : memref<1x4x1xf32, #tpu.memory_space<vmem>>, vector<1x4x1xf32>
    %2 = vector.broadcast %1 : vector<1x4x1xf32> to vector<2x4x256xf32>
    %3 = arith.mulf %0, %2 : vector<2x4x256xf32>
    %cst = arith.constant dense<0.000000e+00> : vector<2x256xf32>
    %4 = vector.multi_reduction <add>, %3, %cst [1] : vector<2x4x256xf32> to vector<2x256xf32>
    %5 = vector.shape_cast %4 : vector<2x256xf32> to vector<2x1x256xf32>
    %c0_5 = arith.constant 0 : index
    %6 = memref.load %arg3[%c0_5] : memref<1xf32, #tpu.memory_space<smem>>
    %7 = vector.broadcast %6 : f32 to vector<2x1x256xf32>
    %8 = arith.addf %5, %7 : vector<2x1x256xf32>
    %9 = arith.negf %8 : vector<2x1x256xf32>
    %10 = math.exp %9 : vector<2x1x256xf32>
    %cst_6 = arith.constant 1.000000e+00 : f32
    %11 = vector.broadcast %cst_6 : f32 to vector<2x1x256xf32>
    %12 = arith.addf %11, %10 : vector<2x1x256xf32>
    %13 = arith.divf %11, %12 : vector<2x1x256xf32>
    %c0_7 = arith.constant 0 : index
    %c0_8 = arith.constant 0 : index
    %c0_9 = arith.constant 0 : index
    %14 = vector.load %arg4[%c0_7, %c0_8, %c0_9] : memref<2x1x256xf32, #tpu.memory_space<vmem>>, vector<2x1x256xf32>
    tpu.vector_store %arg4[%c0_7, %c0_8, %c0_9], %13 {strides = array<i32>} : memref<2x1x256xf32, #tpu.memory_space<vmem>>, vector<2x1x256xf32>,
    return
  }
  func.func @transform_0(%arg0: i32) -> (i32, i32, i32) {
    %c0_i32 = arith.constant 0 : i32
    %c0_i32_0 = arith.constant 0 : i32
    %c0_i32_1 = arith.constant 0 : i32
    return %arg0, %c0_i32, %c0_i32_0 : i32, i32, i32
  }
  func.func @transform_1(%arg0: i32) -> (i32, i32, i32) {
    %c0_i32 = arith.constant 0 : i32
    %c0_i32_0 = arith.constant 0 : i32
    %c0_i32_1 = arith.constant 0 : i32
    %c0_i32_2 = arith.constant 0 : i32
    return %c0_i32, %c0_i32_0, %c0_i32_1 : i32, i32, i32
  }
  func.func @transform_2(%arg0: i32) -> i32 {
    %c0_i32 = arith.constant 0 : i32
    %c0_i32_0 = arith.constant 0 : i32
    return %c0_i32 : i32
  }
  func.func @transform_3(%arg0: i32) -> (i32, i32, i32) {
    %c0_i32 = arith.constant 0 : i32
    %c0_i32_0 = arith.constant 0 : i32
    %c0_i32_1 = arith.constant 0 : i32
    return %arg0, %c0_i32, %c0_i32_0 : i32, i32, i32
  }
}

module attributes {stable_mosaic.version = 11 : i64} {
  func.func @_adj_kernel(%arg0: i32, %arg1: memref<32x4xf32, #tpu.memory_space<vmem>>, %arg2: memref<4x64xf32, #tpu.memory_space<vmem>>, %arg3: memref<1x64xf32, #tpu.memory_space<vmem>>, %arg4: memref<1x64xf32, #tpu.memory_space<vmem>>, %arg5: memref<1x64xf32, #tpu.memory_space<vmem>>, %arg6: memref<32x64xf32, #tpu.memory_space<vmem>>) attributes {dimension_semantics = [#tpu.dimension_semantics<arbitrary>], iteration_bounds = array<i64: 1>, scalar_prefetch = 0 : i64, scratch_operands = 0 : i64, tpu.core_type = #tpu.core_type<tc>, window_params = [{pipeline_mode = #tpu.pipeline_mode<synchronous>, transform_indices = @transform_0, window_bounds = array<i64: 32, 4>}, {pipeline_mode = #tpu.pipeline_mode<synchronous>, transform_indices = @transform_1, window_bounds = array<i64: 4, 64>}, {pipeline_mode = #tpu.pipeline_mode<synchronous>, transform_indices = @transform_2, window_bounds = array<i64: 1, 64>}, {pipeline_mode = #tpu.pipeline_mode<synchronous>, transform_indices = @transform_3, window_bounds = array<i64: 1, 64>}, {pipeline_mode = #tpu.pipeline_mode<synchronous>, transform_indices = @transform_4, window_bounds = array<i64: 1, 64>}, {pipeline_mode = #tpu.pipeline_mode<synchronous>, transform_indices = @transform_5, window_bounds = array<i64: 32, 64>}]} {
    %c0 = arith.constant 0 : index
    %c0_0 = arith.constant 0 : index
    %0 = vector.load %arg1[%c0, %c0_0] : memref<32x4xf32, #tpu.memory_space<vmem>>, vector<32x4xf32>
    %c0_1 = arith.constant 0 : index
    %c0_2 = arith.constant 0 : index
    %1 = vector.load %arg2[%c0_1, %c0_2] : memref<4x64xf32, #tpu.memory_space<vmem>>, vector<4x64xf32>
    %cst = arith.constant dense<0.000000e+00> : vector<32x64xf32>
    %2 = tpu.matmul %0, %1, %cst {dimension_numbers = #tpu.dot_dimension_numbers<[1], [0], [0], [1], [0, 0, 1, 1], [], []>, precision = #tpu.contract_precision<fp32>} : vector<32x4xf32>, vector<4x64xf32>, vector<32x64xf32> -> vector<32x64xf32>
    %c0_3 = arith.constant 0 : index
    %c0_4 = arith.constant 0 : index
    %3 = vector.load %arg3[%c0_3, %c0_4] : memref<1x64xf32, #tpu.memory_space<vmem>>, vector<1x64xf32>
    %4 = vector.broadcast %3 : vector<1x64xf32> to vector<32x64xf32>
    %5 = arith.addf %2, %4 : vector<32x64xf32>
    %cst_5 = arith.constant dense<0.000000e+00> : vector<64xf32>
    %6 = vector.multi_reduction <add>, %5, %cst_5 [0] : vector<32x64xf32> to vector<64xf32>
    %7 = vector.shape_cast %6 : vector<64xf32> to vector<1x64xf32>
    %cst_6 = arith.constant 3.200000e+01 : f32
    %8 = vector.broadcast %cst_6 : f32 to vector<1x64xf32>
    %9 = arith.divf %7, %8 : vector<1x64xf32>
    %10 = vector.broadcast %9 : vector<1x64xf32> to vector<32x64xf32>
    %11 = arith.subf %5, %10 : vector<32x64xf32>
    %12 = arith.mulf %11, %11 : vector<32x64xf32>
    %cst_7 = arith.constant dense<0.000000e+00> : vector<64xf32>
    %13 = vector.multi_reduction <add>, %12, %cst_7 [0] : vector<32x64xf32> to vector<64xf32>
    %14 = vector.shape_cast %13 : vector<64xf32> to vector<1x64xf32>
    %cst_8 = arith.constant 3.200000e+01 : f32
    %15 = vector.broadcast %cst_8 : f32 to vector<1x64xf32>
    %16 = arith.divf %14, %15 : vector<1x64xf32>
    %17 = vector.broadcast %9 : vector<1x64xf32> to vector<32x64xf32>
    %18 = arith.subf %5, %17 : vector<32x64xf32>
    %cst_9 = arith.constant 9.99999974E-6 : f32
    %19 = vector.broadcast %cst_9 : f32 to vector<1x64xf32>
    %20 = arith.addf %16, %19 : vector<1x64xf32>
    %21 = math.rsqrt %20 : vector<1x64xf32>
    %22 = vector.broadcast %21 : vector<1x64xf32> to vector<32x64xf32>
    %23 = arith.mulf %18, %22 : vector<32x64xf32>
    %c0_10 = arith.constant 0 : index
    %c0_11 = arith.constant 0 : index
    %24 = vector.load %arg4[%c0_10, %c0_11] : memref<1x64xf32, #tpu.memory_space<vmem>>, vector<1x64xf32>
    %25 = vector.broadcast %24 : vector<1x64xf32> to vector<32x64xf32>
    %26 = arith.mulf %23, %25 : vector<32x64xf32>
    %c0_12 = arith.constant 0 : index
    %c0_13 = arith.constant 0 : index
    %27 = vector.load %arg5[%c0_12, %c0_13] : memref<1x64xf32, #tpu.memory_space<vmem>>, vector<1x64xf32>
    %28 = vector.broadcast %27 : vector<1x64xf32> to vector<32x64xf32>
    %29 = arith.addf %26, %28 : vector<32x64xf32>
    %30 = math.tanh %29 : vector<32x64xf32>
    %cst_14 = arith.constant 0.000000e+00 : f32
    %31 = vector.broadcast %cst_14 : f32 to vector<32x64xf32>
    %32 = arith.maximumf %30, %31 : vector<32x64xf32>
    %c0_15 = arith.constant 0 : index
    %c0_16 = arith.constant 0 : index
    %33 = vector.load %arg6[%c0_15, %c0_16] : memref<32x64xf32, #tpu.memory_space<vmem>>, vector<32x64xf32>
    tpu.vector_store %arg6[%c0_15, %c0_16], %32 {strides = array<i32>} : memref<32x64xf32, #tpu.memory_space<vmem>>, vector<32x64xf32>,
    return
  }
  func.func @transform_0(%arg0: i32) -> (i32, i32) {
    %c0_i32 = arith.constant 0 : i32
    %c0_i32_0 = arith.constant 0 : i32
    %c0_i32_1 = arith.constant 0 : i32
    return %c0_i32, %c0_i32_0 : i32, i32
  }
  func.func @transform_1(%arg0: i32) -> (i32, i32) {
    %c0_i32 = arith.constant 0 : i32
    %c0_i32_0 = arith.constant 0 : i32
    %c0_i32_1 = arith.constant 0 : i32
    return %c0_i32, %c0_i32_0 : i32, i32
  }
  func.func @transform_2(%arg0: i32) -> (i32, i32) {
    %c0_i32 = arith.constant 0 : i32
    %c0_i32_0 = arith.constant 0 : i32
    %c0_i32_1 = arith.constant 0 : i32
    return %c0_i32, %c0_i32_0 : i32, i32
  }
  func.func @transform_3(%arg0: i32) -> (i32, i32) {
    %c0_i32 = arith.constant 0 : i32
    %c0_i32_0 = arith.constant 0 : i32
    %c0_i32_1 = arith.constant 0 : i32
    return %c0_i32, %c0_i32_0 : i32, i32
  }
  func.func @transform_4(%arg0: i32) -> (i32, i32) {
    %c0_i32 = arith.constant 0 : i32
    %c0_i32_0 = arith.constant 0 : i32
    %c0_i32_1 = arith.constant 0 : i32
    return %c0_i32, %c0_i32_0 : i32, i32
  }
  func.func @transform_5(%arg0: i32) -> (i32, i32) {
    %c0_i32 = arith.constant 0 : i32
    %c0_i32_0 = arith.constant 0 : i32
    %c0_i32_1 = arith.constant 0 : i32
    return %c0_i32, %c0_i32_0 : i32, i32
  }
}

</mosaic_0001>

<bundles_post_ra>
// kernel: attention_branch_forward.4
= control target key start
LH: loop header
LB: loop body
LE: loop exit
PB: predicated region body
PF: predicated region fallthrough
CT: control target
= control target key end

     0   :  { %v167_v0 = vmov 0   ;;  %v168_v2 = vmov 839922192   ;;  %v25_v4 = vlaneseq  ;;  %vm38_vm0 = vcmask 1043456   ;;  %s214_s1 = inlined_call_operand.vmem [shape: f32[1,4,1], index: 1, kind: input, shape index: {}]   ;;  %s215_s0 = inlined_call_operand.vmem [shape: f32[2,4,256], index: 0, kind: input, shape index: {}]   ;;  %s216_s2 = inlined_call_operand.<no memory space> [shape: f32[1], index: 2, kind: input, shape index: {}]   ;;  %s217_s3 = inlined_call_operand.vmem [shape: f32[2,1,256], index: 3, kind: output, shape index: {}]  }
   0x1   :  { %150 = vset.pattern.permute.xlu0 %v167_v0  ;;  %v17_v1 = vld [vmem:[%s214_s1] sm:$0xf]  ;;  %v23_v3 = vunpack.c.l.s4 %v168_v2  ;;  %v16_v10 = vld [vmem:[%s215_s0 + $0x8] sm:$0xff]  ;;  %v68_v38 = vstv %s216_s2  ;;  %v169_v61 = vmov 1966171168  }
   0x2   :  { %20 = vperm.xlu0 %150, %v17_v1   ;;  %v194_v6 = vshrl.u32 %v25_v4, 7  ;;  %v15_v9 = vld [vmem:[%s215_s0] sm:$0xff]  ;;  %v103_v62 = vunpack.c.l.s4 %v169_v61  ;;  %vm135_vm1 = vcmp.lt.s32.totalorder %v25_v4, 256 }
   0x3   :  { %v24_v5 = vunpack.c.0.s8 %v23_v3 }
   0x4   :  { %v104_v63 = vunpack.c.0.s8 %v103_v62 }
   0x5   :  { %v27_v7 = vsub.s32 %v24_v5, %v194_v6 }
   0x6   :  { %v107_v2 = vsub.s32 %v104_v63, %v194_v6 }
  0x81   :  { %v21_v8 = vpop.permute.xlu0 %20 }
  0x82   :  { %v28_v11 = vrot.slane %v21_v8, %v27_v7 }
  0x84   :  { %v30_v12 = vmul.f32 %v28_v11, %v15_v9  ;;  %v31_v13 = vmul.f32 %v28_v11, %v16_v10 }
  0x86   :  { %v34_v14 = vcombine.high %v30_v12, %v30_v12  ;;  %v35_v15 = vcombine.high %v31_v13, %v31_v13  ;;  %v39_v16 = vsel %vm38_vm0, %v30_v12, 0.0  ;;  %v53_v17 = vsel %vm38_vm0, %v31_v13, 0.0 }
  0x87   :  { %v40_v18 = vrot.slane %v39_v16, 4  ;;  %v54_v19 = vrot.slane %v53_v17, 4 }
  0x88   :  { %v46_v20 = vsel %vm38_vm0, %v34_v14, 0.0  ;;  %v60_v21 = vsel %vm38_vm0, %v35_v15, 0.0 }
  0x89   :  { %v41_v22 = vadd.f32 %v40_v18, %v39_v16  ;;  %v47_v23 = vrot.slane %v46_v20, 4  ;;  %v55_v24 = vadd.f32 %v54_v19, %v53_v17  ;;  %v61_v25 = vrot.slane %v60_v21, 4 }
  0x8b   :  { %v42_v26 = vrot.slane %v41_v22, 2  ;;  %v48_v27 = vadd.f32 %v47_v23, %v46_v20  ;;  %v56_v28 = vrot.slane %v55_v24, 2  ;;  %v62_v29 = vadd.f32 %v61_v25, %v60_v21 }
  0x8d   :  { %v43_v30 = vadd.f32 %v42_v26, %v41_v22  ;;  %v49_v31 = vrot.slane %v48_v27, 2  ;;  %v57_v32 = vadd.f32 %v56_v28, %v55_v24  ;;  %v63_v33 = vrot.slane %v62_v29, 2 }
  0x8f   :  { %v44_v34 = vrot.slane %v43_v30, 1  ;;  %v50_v35 = vadd.f32 %v49_v31, %v48_v27  ;;  %v58_v36 = vrot.slane %v57_v32, 1  ;;  %v64_v37 = vadd.f32 %v63_v33, %v62_v29 }
  0x91   :  { %v45_v39 = vadd.f32 %v44_v34, %v43_v30  ;;  %v51_v40 = vrot.slane %v50_v35, 1  ;;  %v59_v41 = vadd.f32 %v58_v36, %v57_v32  ;;  %v65_v42 = vrot.slane %v64_v37, 1 }
  0x93   :  { %v52_v43 = vadd.f32 %v51_v40, %v50_v35  ;;  %v66_v44 = vadd.f32 %v65_v42, %v64_v37  ;;  %v69_v45 = vadd.f32 %v68_v38, %v45_v39  ;;  %v71_v46 = vadd.f32 %v68_v38, %v59_v41 }
  0x95   :  { %v70_v47 = vadd.f32 %v68_v38, %v52_v43  ;;  %v72_v48 = vadd.f32 %v68_v38, %v66_v44  ;;  %v143_v49 = vmul.f32 -1.442695, %v69_v45  ;;  %v145_v50 = vmul.f32 -1.442695, %v71_v46 }
  0x97   :  { %151 = vpow2.f32 %v143_v49  ;;  %v144_v51 = vmul.f32 -1.442695, %v70_v47  ;;  %v146_v52 = vmul.f32 -1.442695, %v72_v48 }
  0x98   :  { %153 = vpow2.f32 %v145_v50 }
  0x99   :  { %155 = vpow2.f32 %v144_v51 }
  0x9a   :  { %157 = vpow2.f32 %v146_v52 }
  0xa1   :  { %v152_v53 = vpop.eup %151 }
  0xa2   :  { %v154_v54 = vpop.eup %153  ;;  %v85_v55 = vadd.f32 1.0, %v152_v53 }
  0xa3   :  { %v156_v56 = vpop.eup %155  ;;  %v87_v57 = vadd.f32 1.0, %v154_v54 }
  0xa4   :  { %v158_v58 = vpop.eup %157  ;;  %v86_v59 = vadd.f32 1.0, %v156_v56  ;;  %159 = vrcp.f32 %v85_v55 }
  0xa5   :  { %v88_v60 = vadd.f32 1.0, %v158_v58  ;;  %161 = vrcp.f32 %v87_v57 }
  0xa6   :  { %163 = vrcp.f32 %v86_v59 }
  0xa7   :  { %165 = vrcp.f32 %v88_v60 }
  0xae   :  { %v160_v0 = vpop.eup %159 }
  0xaf   :  { %v162_v1 = vpop.eup %161 }
  0xb0   :  { %v164_v3 = vpop.eup %163 }
  0xb1   :  { %v166_v5 = vpop.eup %165  ;;  %v101_v7 = vcombine.low %v160_v0, %v164_v3 }
  0xb2   :  { %v116_v8 = vcombine.low %v162_v1, %v166_v5 }
  0xb3   :  { %v108_v9 = vrot.slane %v101_v7, %v107_v2 }
  0xb4   :  { %v123_v10 = vrot.slane %v116_v8, %v107_v2 }
  0xb5   :  { %v115_v11 = vrot.slane %v108_v9, %v107_v2 }
  0xb6   :  { %v130_v12 = vrot.slane %v123_v10, %v107_v2 }
  0xb7   :  { %137 = vst.msk [vmem:[%s217_s3] sm:$0x3] %vm135_vm1, %v115_v11 }
  0xb8   :  { %138 = vst.msk [vmem:[%s217_s3 + $0x2] sm:$0x3] %vm135_vm1, %v130_v12 }

// kernel: attention_branch_forward.3
= control target key start
LH: loop header
LB: loop body
LE: loop exit
PB: predicated region body
PF: predicated region fallthrough
CT: control target
= control target key end

     0   :  { %vm17_vm0 = vcmask 27648   ;;  %v2066_v56 = vmov 0.0   ;;  %vm528_vm1 = vcmask 125952   ;;  %s2232_s1 = inlined_call_operand.vmem [shape: f32[16,256], index: 1, kind: input, shape index: {}]   ;;  %s2233_s0 = inlined_call_operand.vmem [shape: f32[2,4,256], index: 0, kind: input, shape index: {}]   ;;  %s2234_s2 = inlined_call_operand.vmem [shape: f32[4,4], index: 2, kind: output, shape index: {0}]   ;;  %s2235_s3 = inlined_call_operand.vmem [shape: f32[2,4,16], index: 3, kind: output, shape index: {1}]  }
   0x1   :  { %v20_v0 = vld [vmem:[%s2232_s1 + $0x8] sm:$0xff]  ;;  %v22_v1 = vld [vmem:[%s2232_s1 + $0x18] sm:$0xff]  ;;  %v19_v2 = vld [vmem:[%s2232_s1] sm:$0xff]  ;;  %18 = vst.msk [vmem:[%s2234_s2] sm:$0xf] %vm17_vm0, %v2066_v56 }
   0x2   :  { %v28_v3 = vand.u32 4294901760, %v20_v0  ;;  %v32_v4 = vand.u32 4294901760, %v22_v1  ;;  %v21_v5 = vld [vmem:[%s2232_s1 + $0x10] sm:$0xff]  ;;  %v30_v6 = vand.u32 4294901760, %v19_v2  ;;  %v24_v7 = vld [vmem:[%s2233_s0] sm:$0xff]  ;;  %v1994_v17 = vld [vmem:[%s2233_s0 + $0x8] sm:$0xff] }
   0x3   :  { %v34_v8 = vand.u32 4294901760, %v21_v5  ;;  %v26_v9 = vcombine.high %v24_v7, %v24_v7  ;;  %v2102_v10 = vand.u32 4294901760, %v24_v7  ;;  %v533_v29 = vcombine.high %v1994_v17, %v1994_v17 }
   0x4   :  { %v2104_v11 = vpack.c.bf16 %v32_v4, %v28_v3  ;;  %v113_v12 = vsub.f32 %v20_v0, %v28_v3  ;;  %v125_v13 = vsub.f32 %v22_v1, %v32_v4  ;;  %v119_v20 = vsub.f32 %v19_v2, %v30_v6 }
   0x5   :  { %v2106_v14 = vpack.c.bf16 %v34_v8, %v30_v6  ;;  %v2108_v15 = vand.u32 4294901760, %v26_v9  ;;  %v2111_v16 = vsub.f32 %v24_v7, %v2102_v10  ;;  %v131_v21 = vsub.f32 %v21_v5, %v34_v8 }
   0x6   :  { %1997 = vmatprep.subr.bf16.mxu1 %v2104_v11  ;;  %2009 = vmatprep.subr.bf16.mxu0 %v2104_v11  ;;  %v114_v18 = vand.u32 4294901760, %v113_v12  ;;  %v126_v19 = vand.u32 4294901760, %v125_v13  ;;  %v120_v27 = vand.u32 4294901760, %v119_v20  ;;  %v2141_v41 = vand.u32 4294901760, %v533_v29 }
   0x7   :  { %1999 = vmatpush1.bf16.xpose.msra.mxu1 %v2106_v14  ;;  %2011 = vmatpush1.bf16.xpose.msra.mxu0 %v2106_v14  ;;  %v2121_v22 = vsub.f32 %v26_v9, %v2108_v15  ;;  %v2124_v23 = vand.u32 4294901760, %v2111_v16  ;;  %v132_v31 = vand.u32 4294901760, %v131_v21  ;;  %v2004_v44 = vpack.c.bf16 %v125_v13, %v113_v12 }
   0x8   :  { %v115_v24 = vsub.f32 %v113_v12, %v114_v18  ;;  %v127_v25 = vsub.f32 %v125_v13, %v126_v19  ;;  %v2126_v26 = vpack.c.bf16 %v126_v19, %v114_v18  ;;  %v121_v34 = vsub.f32 %v119_v20, %v120_v27 }
   0x9   :  { %v2129_v28 = vand.u32 4294901760, %v2121_v22  ;;  %v105_v30 = vsub.f32 %v2111_v16, %v2124_v23  ;;  %v133_v36 = vsub.f32 %v131_v21, %v132_v31  ;;  %v2137_v37 = vpack.c.bf16 %v132_v31, %v120_v27 }
   0xa   :  { %v116_v32 = vand.u32 4294901760, %v115_v24  ;;  %v128_v33 = vand.u32 4294901760, %v127_v25  ;;  %2013 = vmatprep.subr.bf16.mxu0 %v2126_v26  ;;  %v122_v40 = vand.u32 4294901760, %v121_v34  ;;  %v2148_v46 = vand.u32 4294901760, %v1994_v17 }
   0xb   :  { %357 = vmatprep.mubr.f32.mxu0 %v2129_v28  ;;  %v99_v35 = vsub.f32 %v2121_v22, %v2129_v28  ;;  %v2139_v39 = vand.u32 4294901760, %v105_v30  ;;  %v134_v43 = vand.u32 4294901760, %v133_v36  ;;  %v602_v47 = vsub.f32 %v533_v29, %v2141_v41 }
   0xc   :  { %v2000_v38 = vpack.c.bf16 %v128_v33, %v116_v32  ;;  %v608_v48 = vsub.f32 %v1994_v17, %v2148_v46  ;;  %v2006_v49 = vpack.c.bf16 %v131_v21, %v119_v20  ;;  %v1981_v33 = vld [vmem:[%s2234_s2] sm:$0xf] }
   0xd   :  { %v2143_v42 = vand.u32 4294901760, %v99_v35  ;;  %v2002_v45 = vpack.c.bf16 %v134_v43, %v122_v40  ;;  %v603_v50 = vand.u32 4294901760, %v602_v47 }
   0xe   :  { %2001 = vmatprep.subr.bf16.mxu1 %v2000_v38  ;;  %361 = vmatmul.mubr.f32.vlgmr.msra.gmra.mrb[0].mxu0 %v2124_v23  ;;  %v609_v51 = vand.u32 4294901760, %v608_v48 }
   0xf   :  { %101 = vmatprep.mubr.f32.mxu1 %v2143_v42  ;;  %2015 = vmatpush1.bf16.xpose.msra.mxu0 %v2137_v37  ;;  %v604_v52 = vsub.f32 %v602_v47, %v603_v50 }
  0x10   :  { %107 = vmatmul.mubr.f32.vlgmr.msra.gmra.mrb[0].mxu1 %v2139_v39  ;;  %443 = vmatprep.mubr.f32.mxu0 %v2108_v15  ;;  %v610_v53 = vsub.f32 %v608_v48, %v609_v51 }
  0x11   :  { %2003 = vmatpush1.bf16.xpose.msra.mxu1 %v2002_v45  ;;  %197 = vmatprep.mubr.f32.mxu1 %v2108_v15  ;;  %v605_v54 = vand.u32 4294901760, %v604_v52 }
  0x12   :  { %2005 = vmatprep.subr.bf16.mxu1 %v2004_v44  ;;  %2017 = vmatprep.subr.bf16.mxu0 %v2104_v11  ;;  %v611_v55 = vand.u32 4294901760, %v610_v53 }
  0x16   :  { %445 = vmatmul.mubr.f32.vlgmr.msra.gmra.mrb[0].mxu0 %v2102_v10 }
  0x17   :  { %2019 = vmatpush1.bf16.xpose.msra.mxu0 %v2106_v14  ;;  %519 = vmatprep.mubr.f32.mxu0 %v2108_v15 }
  0x18   :  { %199 = vmatmul.mubr.f32.vlgmr.msra.gmra.mrb[0].mxu1 %v2102_v10  ;;  %2021 = vmatprep.subr.bf16.mxu0 %v2104_v11 }
  0x19   :  { %2007 = vmatpush1.bf16.xpose.msra.mxu1 %v2006_v49  ;;  %278 = vmatprep.mubr.f32.mxu1 %v2121_v22 }
  0x1a   :  { %536 = vmatprep.subr.mxu1 %v2141_v41 }
  0x1e   :  { %521 = vmatmul.mubr.f32.vlgmr.msra.gmra.mrb[0].mxu0 %v2102_v10 }
  0x1f   :  { %2023 = vmatpush1.bf16.xpose.msra.mxu0 %v2106_v14  ;;  %1552 = vmatprep.mubr.f32.mxu0 %v605_v54 }
  0x20   :  { %281 = vmatmul.mubr.f32.vlgmr.msra.gmra.mrb[0].mxu1 %v2111_v16  ;;  %2025 = vmatprep.subr.bf16.mxu0 %v2000_v38 }
  0x21   :  { %538 = vmatpush1.xpose.msra.mxu1 %v2148_v46  ;;  %606 = vmatprep.mubr.f32.mxu1 %v605_v54 }
  0x22   :  { %622 = vmatprep.subr.mxu1 %v605_v54 }
  0x24   :  { %612 = vmatmul.mubr.f32.vlgmr.msra.gmra.mrb[2].mxu1 %v611_v55 }
  0x25   :  { %628 = vmatpush1.xpose.msra.mxu1 %v611_v55  ;;  %692 = vmatprep.mubr.f32.mxu1 %v2141_v41 }
  0x26   :  { %701 = vmatprep.subr.mxu1 %v602_v47  ;;  %1558 = vmatmul.mubr.f32.vlgmr.msra.gmra.mrb[2].mxu0 %v611_v55 }
  0x27   :  { %2027 = vmatpush1.bf16.xpose.msra.mxu0 %v2002_v45  ;;  %1648 = vmatprep.mubr.f32.mxu0 %v2141_v41 }
  0x28   :  { %694 = vmatmul.mubr.f32.vlgmr.msra.gmra.mrb[4].mxu1 %v2148_v46  ;;  %2029 = vmatprep.subr.bf16.mxu0 %v2004_v44 }
  0x29   :  { %704 = vmatpush1.xpose.msra.mxu1 %v608_v48  ;;  %769 = vmatprep.mubr.f32.mxu1 %v602_v47 }
  0x2a   :  { %778 = vmatprep.subr.mxu1 %v2141_v41 }
  0x2c   :  { %772 = vmatmul.mubr.f32.vlgmr.msra.gmra.mrb[6].mxu1 %v608_v48 }
  0x2d   :  { %780 = vmatpush1.xpose.msra.mxu1 %v2148_v46  ;;  %846 = vmatprep.mubr.f32.mxu1 %v603_v50 }
  0x2e   :  { %858 = vmatprep.subr.mxu1 %v603_v50  ;;  %1650 = vmatmul.mubr.f32.vlgmr.msra.gmra.mrb[2].mxu0 %v2148_v46 }
  0x2f   :  { %2031 = vmatpush1.bf16.xpose.msra.mxu0 %v2006_v49  ;;  %1729 = vmatprep.mubr.f32.mxu0 %v602_v47 }
  0x30   :  { %850 = vmatmul.mubr.f32.vlgmr.msra.gmra.mrb[8].mxu1 %v609_v51  ;;  %2033 = vmatprep.subr.bf16.mxu0 %v2104_v11 }
  0x31   :  { %862 = vmatpush1.xpose.msra.mxu1 %v609_v51  ;;  %926 = vmatprep.mubr.f32.mxu1 %v2141_v41 }
  0x32   :  { %934 = vmatprep.subr.mxu1 %v2141_v41 }
  0x34   :  { %928 = vmatmul.mubr.f32.vlgmr.msra.gmra.mrb[10].mxu1 %v2148_v46 }
  0x35   :  { %936 = vmatpush1.xpose.msra.mxu1 %v2148_v46  ;;  %1000 = vmatprep.mubr.f32.mxu1 %v2141_v41 }
  0x36   :  { %1008 = vmatprep.subr.mxu1 %v2108_v15  ;;  %1732 = vmatmul.mubr.f32.vlgmr.msra.gmra.mrb[2].mxu0 %v608_v48 }
  0x37   :  { %2035 = vmatpush1.bf16.xpose.msra.mxu0 %v2106_v14  ;;  %1808 = vmatprep.mubr.f32.mxu0 %v603_v50 }
  0x38   :  { %1002 = vmatmul.mubr.f32.vlgmr.msra.gmra.mrb[12].mxu1 %v2148_v46  ;;  %2037 = vmatprep.subr.bf16.mxu0 %v2126_v26 }
  0x39   :  { %1010 = vmatpush1.xpose.msra.mxu1 %v2102_v10  ;;  %1078 = vmatprep.mubr.f32.mxu1 %v2143_v42 }
  0x3a   :  { %1094 = vmatprep.subr.mxu1 %v2143_v42 }
  0x3c   :  { %1084 = vmatmul.mubr.f32.vlgmr.msra.gmra.mrb[14].mxu1 %v2139_v39 }
  0x3d   :  { %1100 = vmatpush1.xpose.msra.mxu1 %v2139_v39  ;;  %1164 = vmatprep.mubr.f32.mxu1 %v2108_v15 }
  0x3e   :  { %1173 = vmatprep.subr.mxu1 %v2121_v22  ;;  %1812 = vmatmul.mubr.f32.vlgmr.msra.gmra.mrb[2].mxu0 %v609_v51 }
  0x3f   :  { %2039 = vmatpush1.bf16.xpose.msra.mxu0 %v2137_v37  ;;  %1894 = vmatprep.mubr.f32.mxu0 %v2141_v41 }
  0x40   :  { %1166 = vmatmul.mubr.f32.vlgmr.msra.gmra.mrb[16].mxu1 %v2102_v10  ;;  %2041 = vmatprep.subr.bf16.mxu0 %v2104_v11 }
  0x41   :  { %1176 = vmatpush1.xpose.msra.mxu1 %v2111_v16  ;;  %1241 = vmatprep.mubr.f32.mxu1 %v2121_v22 }
  0x42   :  { %1250 = vmatprep.subr.mxu1 %v2108_v15 }
  0x44   :  { %1244 = vmatmul.mubr.f32.vlgmr.msra.gmra.mrb[18].mxu1 %v2111_v16 }
  0x45   :  { %1252 = vmatpush1.xpose.msra.mxu1 %v2102_v10  ;;  %1318 = vmatprep.mubr.f32.mxu1 %v2129_v28 }
  0x46   :  { %1330 = vmatprep.subr.mxu1 %v2129_v28  ;;  %1896 = vmatmul.mubr.f32.vlgmr.msra.gmra.mrb[2].mxu0 %v2148_v46 }
  0x47   :  { %2043 = vmatpush1.bf16.xpose.msra.mxu0 %v2106_v14  ;;  %1970 = vmatprep.mubr.f32.mxu0 %v2141_v41 }
  0x48   :  { %1322 = vmatmul.mubr.f32.vlgmr.msra.gmra.mrb[20].mxu1 %v2124_v23 }
  0x49   :  { %1334 = vmatpush1.xpose.msra.mxu1 %v2124_v23  ;;  %1398 = vmatprep.mubr.f32.mxu1 %v2108_v15 }
  0x4a   :  { %1406 = vmatprep.subr.mxu1 %v2108_v15 }
  0x4c   :  { %1400 = vmatmul.mubr.f32.vlgmr.msra.gmra.mrb[22].mxu1 %v2102_v10 }
  0x4d   :  { %1408 = vmatpush1.xpose.msra.mxu1 %v2102_v10  ;;  %1472 = vmatprep.mubr.f32.mxu1 %v2108_v15 }
  0x4e   :  { %1972 = vmatmul.mubr.f32.vlgmr.msra.gmra.mrb[2].mxu0 %v2148_v46 }
  0x50   :  { %1474 = vmatmul.mubr.f32.vlgmr.msra.gmra.mrb[24].mxu1 %v2102_v10 }
  0xf1   :  { %v522_v57 = vpop.f32.mrb[0].mxu0 }
  0xf2   :  { %v524_v58 = vpop.f32.mrb[1].mxu0 }
  0xf3   :  { %v282_v59 = vpop.f32.mrb[0].mxu1 }
  0xf4   :  { %v2044_v60 = vadd.f32 %v522_v57, %v282_v59  ;;  %v284_v61 = vpop.f32.mrb[1].mxu1 }
  0xf6   :  { %529 = vst.msk [vmem:[%s2235_s3] sm:$0xf] %vm528_vm1, %v2044_v60 }
  0xf7   :  { %v613_v62 = vpop.f32.mrb[2].mxu1 }
  0xf8   :  { %v615_v63 = vpop.f32.mrb[3].mxu1 }
  0xfb   :  { %v695_v0 = vpop.f32.mrb[4].mxu1 }
  0xfc   :  { %v696_v1 = vadd.f32 %v695_v0, %v613_v62  ;;  %v697_v2 = vpop.f32.mrb[5].mxu1 }
  0xff   :  { %v773_v3 = vpop.f32.mrb[6].mxu1 }
 0x100   :  { %v774_v4 = vadd.f32 %v773_v3, %v696_v1  ;;  %v775_v5 = vpop.f32.mrb[7].mxu1 }
 0x103   :  { %v851_v6 = vpop.f32.mrb[8].mxu1 }
 0x104   :  { %v852_v7 = vadd.f32 %v851_v6, %v774_v4  ;;  %v853_v8 = vpop.f32.mrb[9].mxu1 }
 0x107   :  { %v929_v9 = vpop.f32.mrb[10].mxu1 }
 0x108   :  { %v930_v10 = vadd.f32 %v929_v9, %v852_v7  ;;  %v931_v11 = vpop.f32.mrb[11].mxu1 }
 0x10b   :  { %v1003_v12 = vpop.f32.mrb[12].mxu1 }
 0x10c   :  { %v1004_v13 = vadd.f32 %v1003_v12, %v930_v10  ;;  %v1005_v14 = vpop.f32.mrb[13].mxu1 }
 0x10f   :  { %v1085_v15 = vpop.f32.mrb[14].mxu1 }
 0x110   :  { %v1086_v16 = vadd.f32 %v1085_v15, %v1004_v13  ;;  %v1087_v17 = vpop.f32.mrb[15].mxu1 }
 0x113   :  { %v1167_v18 = vpop.f32.mrb[16].mxu1 }
 0x114   :  { %v1168_v19 = vadd.f32 %v1167_v18, %v1086_v16  ;;  %v1169_v20 = vpop.f32.mrb[17].mxu1 }
 0x117   :  { %v1245_v21 = vpop.f32.mrb[18].mxu1 }
 0x118   :  { %v1246_v22 = vadd.f32 %v1245_v21, %v1168_v19  ;;  %v1247_v23 = vpop.f32.mrb[19].mxu1 }
 0x11b   :  { %v1323_v24 = vpop.f32.mrb[20].mxu1 }
 0x11c   :  { %v1324_v25 = vadd.f32 %v1323_v24, %v1246_v22  ;;  %v1325_v26 = vpop.f32.mrb[21].mxu1 }
 0x11f   :  { %v1401_v27 = vpop.f32.mrb[22].mxu1 }
 0x120   :  { %v1402_v28 = vadd.f32 %v1401_v27, %v1324_v25  ;;  %v1403_v29 = vpop.f32.mrb[23].mxu1 }
 0x121   :  { %v1973_v30 = vpop.f32.mrb[2].mxu0 }
 0x122   :  { %1995 = vst.msk [vmem:[%s2235_s3 + $0x4] sm:$0xf] %vm528_vm1, %v1973_v30  ;;  %v1975_v31 = vpop.f32.mrb[3].mxu0 }
 0x123   :  { %v1475_v32 = vpop.f32.mrb[24].mxu1 }
 0x124   :  { %v1476_v34 = vadd.f32 %v1475_v32, %v1402_v28  ;;  %v1477_v35 = vpop.f32.mrb[25].mxu1 }
 0x126   :  { %v1982_v36 = vadd.f32 %v1981_v33, %v1476_v34 }
 0x128   :  { %1984 = vst.msk [vmem:[%s2234_s2] sm:$0xf] %vm17_vm0, %v1982_v36 }

// kernel: attention_branch_forward.5
= control target key start
LH: loop header
LB: loop body
LE: loop exit
PB: predicated region body
PF: predicated region fallthrough
CT: control target
= control target key end

     0   :  { %vm45_vm0 = vcmask 1043456   ;;  %vm32_vm1 = vcmask 31744   ;;  %vm624_vm2 = vcmask 523264   ;;  %s899_s1 = inlined_call_operand.vmem [shape: f32[4,64], index: 1, kind: input, shape index: {}]   ;;  %s900_s0 = inlined_call_operand.vmem [shape: f32[32,4], index: 0, kind: input, shape index: {}]   ;;  %s901_s2 = inlined_call_operand.vmem [shape: f32[1,64], index: 2, kind: input, shape index: {}]   ;;  %s902_s3 = inlined_call_operand.vmem [shape: f32[1,64], index: 3, kind: input, shape index: {}]   ;;  %s903_s4 = inlined_call_operand.vmem [shape: f32[1,64], index: 4, kind: input, shape index: {}]   ;;  %s904_s5 = inlined_call_operand.vmem [shape: f32[32,64], index: 5, kind: output, shape index: {}]  }
   0x1   :  { %v24_v0 = vld [vmem:[%s899_s1] sm:$0xf]  ;;  %v21_v2 = vld [vmem:[%s900_s0 + $0x8] sm:$0xff]  ;;  %v22_v6 = vld [vmem:[%s900_s0 + $0x10] sm:$0xff] }
   0x2   :  { %v20_v1 = vld [vmem:[%s900_s0] sm:$0xff]  ;;  %v47_v3 = vsel %vm45_vm0, %v24_v0, 0  ;;  %v37_v5 = vsel %vm32_vm1, %v21_v2, 0  ;;  %v23_v7 = vld [vmem:[%s900_s0 + $0x18] sm:$0xff]  ;;  %v40_v11 = vsel %vm32_vm1, %v22_v6, 0 }
   0x3   :  { %v34_v4 = vsel %vm32_vm1, %v20_v1, 0  ;;  %v50_v8 = vand.u32 4294901760, %v47_v3  ;;  %v125_v10 = vand.u32 4294901760, %v37_v5  ;;  %v135_v12 = vand.u32 4294901760, %v40_v11  ;;  %v706_v37 = vld [vmem:[%s901_s2] ss:$0 sm:$0xff] }
   0x4   :  { %v115_v9 = vand.u32 4294901760, %v34_v4  ;;  %v43_v13 = vsel %vm32_vm1, %v23_v7, 0 }
   0x5   :  { %763 = vmatprep.subr.mxu0 %v50_v8  ;;  %v126_v15 = vsub.f32 %v37_v5, %v125_v10  ;;  %739 = vmatprep.subr.mxu1 %v50_v8  ;;  %v157_v16 = vsub.f32 %v47_v3, %v50_v8  ;;  %v145_v17 = vand.u32 4294901760, %v43_v13  ;;  %v136_v18 = vsub.f32 %v40_v11, %v135_v12 }
   0x6   :  { %v116_v14 = vsub.f32 %v34_v4, %v115_v9  ;;  %764 = vmatpush3.msra.mxu0 %v50_v8  ;;  %740 = vmatpush3.msra.mxu1 %v50_v8 }
   0x7   :  { %v127_v20 = vand.u32 4294901760, %v126_v15  ;;  %v158_v21 = vand.u32 4294901760, %v157_v16  ;;  %v146_v22 = vsub.f32 %v43_v13, %v145_v17  ;;  %v137_v23 = vand.u32 4294901760, %v136_v18 }
   0x8   :  { %v117_v19 = vand.u32 4294901760, %v116_v14 }
   0x9   :  { %v159_v25 = vsub.f32 %v157_v16, %v158_v21  ;;  %v128_v26 = vsub.f32 %v126_v15, %v127_v20  ;;  %v147_v27 = vand.u32 4294901760, %v146_v22  ;;  %771 = vmatprep.subr.mxu0 %v158_v21  ;;  %v138_v28 = vsub.f32 %v136_v18, %v137_v23 }
   0xa   :  { %765 = vmatprep.mubr.f32.mxu0 %v117_v19  ;;  %v118_v24 = vsub.f32 %v116_v14, %v117_v19 }
   0xb   :  { %766 = vmatmul.mubr.f32.vlgmr.msra.gmra.mrb[0].mxu0 %v127_v20  ;;  %v160_v30 = vand.u32 4294901760, %v159_v25  ;;  %v129_v31 = vand.u32 4294901760, %v128_v26  ;;  %v148_v32 = vsub.f32 %v146_v22, %v147_v27  ;;  %v139_v33 = vand.u32 4294901760, %v138_v28  ;;  %v707_v26 = vld [vmem:[%s902_s3] ss:$0 sm:$0xff] }
   0xc   :  { %v119_v29 = vand.u32 4294901760, %v118_v24  ;;  %768 = vmatprep.mubr.f32.mxu0 %v137_v23  ;;  %772 = vmatpush3.msra.mxu0 %v158_v21 }
   0xd   :  { %779 = vmatprep.subr.mxu0 %v50_v8  ;;  %747 = vmatprep.subr.mxu1 %v160_v30  ;;  %v149_v34 = vand.u32 4294901760, %v148_v32 }
   0xe   :  { %741 = vmatprep.mubr.f32.mxu1 %v119_v29 }
   0xf   :  { %742 = vmatmul.mubr.f32.vlgmr.msra.gmra.mrb[0].mxu1 %v129_v31  ;;  %769 = vmatmul.mubr.f32.gmra.mrb[2].mxu0 %v147_v27  ;;  %v708_v31 = vld [vmem:[%s903_s4] ss:$0 sm:$0xff] }
  0x10   :  { %748 = vmatpush3.msra.mxu1 %v160_v30  ;;  %744 = vmatprep.mubr.f32.mxu1 %v139_v33 }
  0x11   :  { %773 = vmatprep.mubr.f32.mxu0 %v115_v9  ;;  %755 = vmatprep.subr.mxu1 %v157_v16 }
  0x13   :  { %745 = vmatmul.mubr.f32.gmra.mrb[2].mxu1 %v149_v34  ;;  %774 = vmatmul.mubr.f32.vlgmr.msra.gmra.mrb[0].mxu0 %v125_v10 }
  0x14   :  { %749 = vmatprep.mubr.f32.mxu1 %v115_v9  ;;  %776 = vmatprep.mubr.f32.mxu0 %v135_v12 }
  0x15   :  { %780 = vmatpush3.msra.mxu0 %v50_v8 }
  0x17   :  { %750 = vmatmul.mubr.f32.vlgmr.msra.gmra.mrb[0].mxu1 %v125_v10  ;;  %777 = vmatmul.mubr.f32.gmra.mrb[2].mxu0 %v145_v17 }
  0x18   :  { %756 = vmatpush3.msra.mxu1 %v157_v16  ;;  %752 = vmatprep.mubr.f32.mxu1 %v135_v12 }
  0x19   :  { %781 = vmatprep.mubr.f32.mxu0 %v115_v9 }
  0x1b   :  { %753 = vmatmul.mubr.f32.gmra.mrb[2].mxu1 %v145_v17  ;;  %782 = vmatmul.mubr.f32.vlgmr.msra.gmra.mrb[0].mxu0 %v125_v10 }
  0x1c   :  { %757 = vmatprep.mubr.f32.mxu1 %v116_v14  ;;  %784 = vmatprep.mubr.f32.mxu0 %v135_v12 }
  0x1f   :  { %758 = vmatmul.mubr.f32.vlgmr.msra.gmra.mrb[0].mxu1 %v126_v15  ;;  %785 = vmatmul.mubr.f32.gmra.mrb[2].mxu0 %v145_v17 }
  0x20   :  { %760 = vmatprep.mubr.f32.mxu1 %v136_v18 }
  0x23   :  { %761 = vmatmul.mubr.f32.gmra.mrb[2].mxu1 %v146_v22 }
  0xee   :  { %v783_v35 = vpop.f32.mrb[0].mxu0 }
  0xef   :  { %v602_v36 = vpop.f32.mrb[1].mxu0 }
  0xf2   :  { %v759_v38 = vpop.f32.mrb[0].mxu1  ;;  %v786_v39 = vpop.f32.mrb[2].mxu0 }
  0xf3   :  { %v787_v40 = vadd.f32 %v759_v38, %v706_v37  ;;  %v319_v41 = vpop.f32.mrb[1].mxu1  ;;  %v614_v42 = vpop.f32.mrb[3].mxu0 }
  0xf4   :  { %v789_v43 = vadd.f32 %v706_v37, %v319_v41 }
  0xf5   :  { %v788_v44 = vadd.f32 %v787_v40, %v783_v35 }
  0xf6   :  { %v790_v45 = vadd.f32 %v789_v43, %v602_v36  ;;  %v762_v46 = vpop.f32.mrb[2].mxu1 }
  0xf7   :  { %v626_v47 = vsel %vm624_vm2, %v788_v44, 0.0  ;;  %v791_v48 = vadd.f32 %v762_v46, %v706_v37  ;;  %v333_v49 = vpop.f32.mrb[3].mxu1 }
  0xf8   :  { %v625_v50 = vsel %vm624_vm2, %v790_v45, 0.0  ;;  %v793_v51 = vadd.f32 %v706_v37, %v333_v49 }
  0xf9   :  { %v627_v52 = vadd.f32 %v626_v47, %v625_v50  ;;  %v792_v53 = vadd.f32 %v791_v48, %v786_v39 }
  0xfa   :  { %v794_v54 = vadd.f32 %v793_v51, %v614_v42 }
  0xfb   :  { %v630_v57 = vsel %vm624_vm2, %v792_v53, 0.0 }
  0xfc   :  { %v628_v55 = vsel %vm624_vm2, %v794_v54, 0.0 }
  0xfd   :  { %v629_v56 = vadd.f32 %v628_v55, %v627_v52 }
  0xff   :  { %v631_v58 = vadd.f32 %v630_v57, %v629_v56 }
 0x101   :  { %v632_v59 = vrot.slane %v631_v58, 4 }
 0x103   :  { %v633_v60 = vadd.f32 %v632_v59, %v631_v58 }
 0x105   :  { %v634_v61 = vrot.slane %v633_v60, 2 }
 0x107   :  { %v635_v62 = vadd.f32 %v634_v61, %v633_v60 }
 0x109   :  { %v636_v63 = vrot.slane %v635_v62, 1 }
 0x10b   :  { %v637_v0 = vadd.f32 %v636_v63, %v635_v62 }
 0x10d   :  { %v639_v1 = vmul.f32 0.03125, %v637_v0 }
 0x10f   :  { %v640_v2 = vsub.f32 %v790_v45, %v639_v1  ;;  %v641_v3 = vsub.f32 %v788_v44, %v639_v1  ;;  %v642_v4 = vsub.f32 %v794_v54, %v639_v1  ;;  %v643_v5 = vsub.f32 %v792_v53, %v639_v1 }
 0x111   :  { %v644_v6 = vmul.f32 %v640_v2, %v640_v2  ;;  %v645_v7 = vmul.f32 %v641_v3, %v641_v3  ;;  %v646_v8 = vmul.f32 %v642_v4, %v642_v4  ;;  %v647_v9 = vmul.f32 %v643_v5, %v643_v5 }
 0x113   :  { %v648_v10 = vsel %vm624_vm2, %v644_v6, 0.0  ;;  %v649_v11 = vsel %vm624_vm2, %v645_v7, 0.0  ;;  %v651_v13 = vsel %vm624_vm2, %v646_v8, 0.0  ;;  %v653_v15 = vsel %vm624_vm2, %v647_v9, 0.0 }
 0x114   :  { %v650_v12 = vadd.f32 %v649_v11, %v648_v10 }
 0x116   :  { %v652_v14 = vadd.f32 %v651_v13, %v650_v12 }
 0x118   :  { %v654_v16 = vadd.f32 %v653_v15, %v652_v14 }
 0x11a   :  { %v655_v17 = vrot.slane %v654_v16, 4 }
 0x11c   :  { %v656_v18 = vadd.f32 %v655_v17, %v654_v16 }
 0x11e   :  { %v657_v19 = vrot.slane %v656_v18, 2 }
 0x120   :  { %v658_v20 = vadd.f32 %v657_v19, %v656_v18 }
 0x122   :  { %v659_v21 = vrot.slane %v658_v20, 1 }
 0x124   :  { %v660_v22 = vadd.f32 %v659_v21, %v658_v20 }
 0x126   :  { %v661_v23 = vmul.f32 0.03125, %v660_v22 }
 0x128   :  { %v662_v24 = vadd.f32 1e-05, %v661_v23 }
 0x12a   :  { %811 = vrsqrt.f32 %v662_v24 }
 0x134   :  { %v812_v25 = vpop.eup %811 }
 0x135   :  { %v664_v27 = vmul.f32 %v812_v25, %v640_v2  ;;  %v665_v28 = vmul.f32 %v812_v25, %v641_v3  ;;  %v666_v29 = vmul.f32 %v812_v25, %v642_v4  ;;  %v667_v30 = vmul.f32 %v812_v25, %v643_v5 }
 0x137   :  { %v675_v32 = vmul.f32 %v707_v26, %v664_v27  ;;  %v676_v33 = vmul.f32 %v707_v26, %v665_v28  ;;  %v677_v34 = vmul.f32 %v707_v26, %v666_v29  ;;  %v678_v35 = vmul.f32 %v707_v26, %v667_v30 }
 0x139   :  { %v686_v36 = vadd.f32 %v708_v31, %v675_v32  ;;  %v687_v37 = vadd.f32 %v708_v31, %v676_v33  ;;  %v688_v38 = vadd.f32 %v708_v31, %v677_v34  ;;  %v689_v39 = vadd.f32 %v708_v31, %v678_v35 }
 0x13b   :  { %813 = vtanh.f32 %v686_v36 }
 0x13c   :  { %815 = vtanh.f32 %v687_v37 }
 0x13d   :  { %817 = vtanh.f32 %v688_v38 }
 0x13e   :  { %819 = vtanh.f32 %v689_v39 }
 0x145   :  { %v814_v40 = vpop.eup %813 }
 0x146   :  { %v816_v41 = vpop.eup %815  ;;  %v694_v42 = vmax.f32 %v814_v40, 0.0 }
 0x147   :  { %v818_v43 = vpop.eup %817  ;;  %v695_v44 = vmax.f32 %v816_v41, 0.0 }
 0x148   :  { %v820_v45 = vpop.eup %819  ;;  %v696_v46 = vmax.f32 %v818_v43, 0.0  ;;  %698 = vst.msk [vmem:[%s904_s5] sm:$0xff] %vm624_vm2, %v694_v42 }
 0x149   :  { %v697_v47 = vmax.f32 %v820_v45, 0.0  ;;  %699 = vst.msk [vmem:[%s904_s5 + $0x8] sm:$0xff] %vm624_vm2, %v695_v44 }
 0x14a   :  { %700 = vst.msk [vmem:[%s904_s5 + $0x10] sm:$0xff] %vm624_vm2, %v696_v46 }
 0x14b   :  { %701 = vst.msk [vmem:[%s904_s5 + $0x18] sm:$0xff] %vm624_vm2, %v697_v47 }

</bundles_post_ra>
